<compile_context>
chip_gen: v7x
topology: tpu7x:2x2x1
jax: 0.10.0
libtpu: 0.0.40
codegen_flags: <defaults>
</compile_context>

<pallas_src>
import functools

import jax
import jax.numpy as jnp
from jax.experimental import pallas as pl
from jax.experimental.pallas import tpu as pltpu


def _round_up(v, m):
    return ((v + m - 1) // m) * m


def _fused_mlp_kernel(x_ref, w1_ref, b1_ref, w2_ref, b2_ref, out_ref):
    # relu(x @ W1_blockdiag + b1) @ W2_masked_scaled + b2, f32 accumulation.
    x = x_ref[...].astype(jnp.bfloat16)                       # cast in-kernel (VPU)
    h = jnp.dot(x, w1_ref[...], preferred_element_type=jnp.float32)
    h = jnp.maximum(h + b1_ref[...], 0.0)
    y = jnp.dot(h.astype(jnp.bfloat16), w2_ref[...],
                preferred_element_type=jnp.float32)
    out_ref[...] = (y + b2_ref[...]).astype(out_ref.dtype)


def prepare_global_model(params, input_sizes, active_segments, output_size):
    """One-time packing of the segmented MLP ensemble (active segments only).

    params:          list of (W1 [in_i, hid_i], b1 [hid_i], W2 [hid_i, out], b2 [out])
    active_segments: iterable of active segment indices (baked in; rebuild if changed)
    Returns (ops, meta): ops = dict of device arrays, meta = dict of Python ints.
    """
    num_segments = len(input_sizes)
    active = sorted(set(int(i) for i in active_segments))
    hid_sizes = [p[0].shape[1] for p in params]
    d_in = sum(input_sizes)
    h_active = sum(hid_sizes[i] for i in active)

    hid_pad = max(_round_up(h_active, 128), 128)
    out_pad = max(_round_up(output_size, 128), 128)
    inv_s = 1.0 / float(num_segments)   # torch.mean over ALL segments (incl. inactive zeros)

    # Block-diagonal over active segments only.  Rows of W1 belonging to inactive
    # segments' input columns stay zero, so x is passed whole with no gather/copy.
    w1 = jnp.zeros((d_in, hid_pad), jnp.float32)
    b1 = jnp.zeros((1, hid_pad), jnp.float32)
    w2 = jnp.zeros((hid_pad, out_pad), jnp.float32)
    b2 = jnp.zeros((1, out_pad), jnp.float32)

    h_off = 0
    for i in active:
        isz, hsz = input_sizes[i], hid_sizes[i]
        in_off = sum(input_sizes[:i])
        w1_i, b1_i, w2_i, b2_i = params[i]
        w1 = w1.at[in_off:in_off + isz, h_off:h_off + hsz].set(w1_i.astype(jnp.float32))
        b1 = b1.at[0, h_off:h_off + hsz].set(b1_i.astype(jnp.float32))
        # 1/S of the mean folded into second-layer weights/bias.
        w2 = w2.at[h_off:h_off + hsz, :output_size].set(w2_i.astype(jnp.float32) * inv_s)
        b2 = b2.at[0, :output_size].add(b2_i.astype(jnp.float32) * inv_s)
        h_off += hsz

    ops = {
        "w1": w1.astype(jnp.bfloat16),   # bf16 weights: half HBM bytes, native MXU rate
        "b1": b1,                        # biases stay f32 (tiny, added post-accumulate)
        "w2": w2.astype(jnp.bfloat16),
        "b2": b2,
    }
    meta = {"d_in": d_in, "output_size": output_size,
            "hid_pad": hid_pad, "out_pad": out_pad,
            "num_segments": num_segments, "active": tuple(active)}
    return ops, meta


def global_model_apply(x, w1, b1, w2, b2, *, output_size):
    """Apply the packed GlobalModel: x [B, sum(input_sizes)] -> [B, output_size]."""
    B, d_in = x.shape
    # Static (Python int) shape checks -- safe under jit.
    assert d_in == w1.shape[0], "x feature dim must match packed W1 rows"
    hid_pad = w1.shape[1]
    out_pad = w2.shape[1]
    assert w2.shape[0] == hid_pad and b1.shape == (1, hid_pad) and b2.shape == (1, out_pad)

    b_pad = _round_up(B, 8)
    if b_pad != B:
        x = jnp.pad(x, ((0, b_pad - B), (0, 0)))   # sublane alignment only when needed

    flops = 2 * b_pad * (d_in * hid_pad + hid_pad * out_pad)
    bytes_accessed = (4 * b_pad * d_in            # x (f32)
                      + 2 * d_in * hid_pad        # w1 (bf16)
                      + 4 * hid_pad               # b1
                      + 2 * hid_pad * out_pad     # w2 (bf16)
                      + 4 * out_pad               # b2
                      + 4 * b_pad * out_pad)      # out (f32)

    vmem_spec = pl.BlockSpec(memory_space=pltpu.MemorySpace.VMEM)
    out = pl.pallas_call(
        _fused_mlp_kernel,
        out_shape=jax.ShapeDtypeStruct((b_pad, out_pad), jnp.float32),
        in_specs=[vmem_spec] * 5,
        out_specs=vmem_spec,
        cost_estimate=pl.CostEstimate(
            flops=flops, transcendentals=0, bytes_accessed=bytes_accessed),
    )(x, w1, b1, w2, b2)

    # Lane-dense output; final narrow slice stays a wrapper op (or fuse into consumer).
    return out[:B, :output_size]


def global_model_reference(x, params, input_sizes, active_segments, output_size):
    """Pure-JAX f32 reference matching the PyTorch forward exactly."""
    B = x.shape[0]
    outs = []
    start = 0
    for i, (isz, (w1, b1, w2, b2)) in enumerate(zip(input_sizes, params)):
        end = start + isz
        if i in active_segments:
            xi = x[:, start:end]
            h = jnp.maximum(xi @ w1 + b1, 0.0)
            outs.append(h @ w2 + b2)
        else:
            outs.append(jnp.zeros((B, output_size), jnp.float32))
        start = end
    return jnp.mean(jnp.stack(outs), axis=0)


if __name__ == "__main__":
    # Small shapes consistent with the module's forward (2-D inputs, per-segment MLPs).
    input_sizes = [32, 48, 64]
    hidden_sizes = [32, 16, 32]
    output_size = 16
    B = 8
    active_segments = [0, 2]

    key = jax.random.PRNGKey(0)
    keys = jax.random.split(key, 1 + 4 * len(input_sizes))
    x = jax.random.normal(keys[0], (B, sum(input_sizes)), jnp.float32)

    # Deterministic parameter init (shapes as nn.Linear in __init__).
    params = []
    for i, (isz, hsz) in enumerate(zip(input_sizes, hidden_sizes)):
        k1, k2, k3, k4 = keys[1 + 4 * i: 1 + 4 * (i + 1)]
        w1 = jax.random.normal(k1, (isz, hsz), jnp.float32) * 0.1
        b1 = jax.random.normal(k2, (hsz,), jnp.float32) * 0.1
        w2 = jax.random.normal(k3, (hsz, output_size), jnp.float32) * 0.1
        b2 = jax.random.normal(k4, (output_size,), jnp.float32) * 0.1
        params.append((w1, b1, w2, b2))

    # Pack once (active mask + 1/S folded into bf16 block-diagonal operands),
    # then run the single-invocation fused kernel.  Static config is bound via
    # functools.partial so jit never sees Python ints as traced leaves.
    ops, meta = prepare_global_model(params, input_sizes, active_segments, output_size)
    apply_fn = jax.jit(functools.partial(global_model_apply,
                                         output_size=meta["output_size"]))
    out = apply_fn(x, ops["w1"], ops["b1"], ops["w2"], ops["b2"])
    out = jax.block_until_ready(out)

    ref = global_model_reference(x, params, input_sizes, active_segments, output_size)
    assert out.shape == (B, output_size)
    # bf16 weights (f32 accumulation) -> tolerance suited to bf16 mantissa.
    assert jnp.allclose(out, ref, atol=5e-2, rtol=5e-2), "mismatch vs reference"

    print("KERNEL_OK")
</pallas_src>

<mosaic_0001>
module attributes {stable_mosaic.version = 11 : i64} {
  func.func @_fused_mlp_kernel(%arg0: memref<8x144xf32, #tpu.memory_space<vmem>>, %arg1: memref<144x128xbf16, #tpu.memory_space<vmem>>, %arg2: memref<1x128xf32, #tpu.memory_space<vmem>>, %arg3: memref<128x128xbf16, #tpu.memory_space<vmem>>, %arg4: memref<1x128xf32, #tpu.memory_space<vmem>>, %arg5: memref<8x128xf32, #tpu.memory_space<vmem>>) attributes {dimension_semantics = [], scalar_prefetch = 0 : i64, scratch_operands = 0 : i64, tpu.core_type = #tpu.core_type<tc>} {
    %c0 = arith.constant 0 : index
    %c0_0 = arith.constant 0 : index
    %0 = vector.load %arg0[%c0, %c0_0] : memref<8x144xf32, #tpu.memory_space<vmem>>, vector<8x144xf32>
    %1 = arith.truncf %0 : vector<8x144xf32> to vector<8x144xbf16>
    %c0_1 = arith.constant 0 : index
    %c0_2 = arith.constant 0 : index
    %2 = vector.load %arg1[%c0_1, %c0_2] : memref<144x128xbf16, #tpu.memory_space<vmem>>, vector<144x128xbf16>
    %cst = arith.constant dense<0.000000e+00> : vector<8x128xf32>
    %3 = tpu.matmul %1, %2, %cst {dimension_numbers = #tpu.dot_dimension_numbers<[1], [0], [0], [1], [0, 0, 1, 1], [], []>} : vector<8x144xbf16>, vector<144x128xbf16>, vector<8x128xf32> -> vector<8x128xf32>
    %c0_3 = arith.constant 0 : index
    %c0_4 = arith.constant 0 : index
    %4 = vector.load %arg2[%c0_3, %c0_4] : memref<1x128xf32, #tpu.memory_space<vmem>>, vector<1x128xf32>
    %5 = vector.broadcast %4 : vector<1x128xf32> to vector<8x128xf32>
    %6 = arith.addf %3, %5 : vector<8x128xf32>
    %cst_5 = arith.constant 0.000000e+00 : f32
    %7 = vector.broadcast %cst_5 : f32 to vector<8x128xf32>
    %8 = arith.maximumf %6, %7 : vector<8x128xf32>
    %9 = arith.truncf %8 : vector<8x128xf32> to vector<8x128xbf16>
    %c0_6 = arith.constant 0 : index
    %c0_7 = arith.constant 0 : index
    %10 = vector.load %arg3[%c0_6, %c0_7] : memref<128x128xbf16, #tpu.memory_space<vmem>>, vector<128x128xbf16>
    %cst_8 = arith.constant dense<0.000000e+00> : vector<8x128xf32>
    %11 = tpu.matmul %9, %10, %cst_8 {dimension_numbers = #tpu.dot_dimension_numbers<[1], [0], [0], [1], [0, 0, 1, 1], [], []>} : vector<8x128xbf16>, vector<128x128xbf16>, vector<8x128xf32> -> vector<8x128xf32>
    %c0_9 = arith.constant 0 : index
    %c0_10 = arith.constant 0 : index
    %12 = vector.load %arg4[%c0_9, %c0_10] : memref<1x128xf32, #tpu.memory_space<vmem>>, vector<1x128xf32>
    %13 = vector.broadcast %12 : vector<1x128xf32> to vector<8x128xf32>
    %14 = arith.addf %11, %13 : vector<8x128xf32>
    %c0_11 = arith.constant 0 : index
    %c0_12 = arith.constant 0 : index
    %15 = vector.load %arg5[%c0_11, %c0_12] : memref<8x128xf32, #tpu.memory_space<vmem>>, vector<8x128xf32>
    tpu.vector_store %arg5[%c0_11, %c0_12], %14 {strides = array<i32>} : memref<8x128xf32, #tpu.memory_space<vmem>>, vector<8x128xf32>,
    return
  }
}

</mosaic_0001>

<bundles_post_ra>
// kernel: global_model_apply.1
= control target key start
LH: loop header
LB: loop body
LE: loop exit
PB: predicated region body
PF: predicated region fallthrough
CT: control target
= control target key end

     0   :  { %10 = vsyncpa [#allocation3], 0  ;;  %s586_s0 = inlined_call_operand.hbm [shape: f32[8,144], index: 0, kind: input, shape index: {}]   ;;  %s587_s1 = inlined_call_operand.hbm [shape: bf16[144,128], index: 1, kind: input, shape index: {}]   ;;  %s588_s2 = inlined_call_operand.vmem [shape: f32[1,128], index: 2, kind: input, shape index: {}]   ;;  %s589_s3 = inlined_call_operand.hbm [shape: bf16[128,128], index: 3, kind: input, shape index: {}]   ;;  %s590_s4 = inlined_call_operand.vmem [shape: f32[1,128], index: 4, kind: input, shape index: {}]   ;;  %s591_s5 = inlined_call_operand.hbm [shape: f32[8,128], index: 5, kind: output, shape index: {}]  }
   0x1   :  { %11 = vsyncpa [#allocation6], 0 }
   0x2   :  { %12 = vsyncpa [#allocation4], 0  ;;  %s487_s18 = smov [#allocation5]   ;;  %s393_s22 = scalar_lea.hbm %s587_s1, 1152 }
   0x3   :  { %s28_s19 = sshll.u32 %s487_s18, 4  ;;  %p394_p0 = scmp.ne.s32.totalorder %s587_s1, %s393_s22  ;;  %s29_s19 = int_to_ptr.vmem [resolvable:$true] %s28_s19 }
   0x4   :  { %p397_p1 = scmp.lt.u32.totalorder %s393_s22, %s587_s1 }
   0x6   :  { %p399_p2 = pnand %p397_p1, %p394_p0 }
   0x8   :  { %402 = shalt.err (!%p399_p2)
}
   0x9   :  { %s403_s27 = scalar_lea.vmem %s29_s19, 1152  ;;  %p408_p4 = scmp.lt.s32.totalorder %s29_s19, %s29_s19 }
   0xa   :  { %p404_p3 = scmp.ne.s32.totalorder %s29_s19, %s403_s27  ;;  %p409_p5 = scmp.lt.s32.totalorder %s403_s27, %s403_s27 }
   0xc   :  { %p410_p6 = por %p409_p5, %p408_p4 }
   0xe   :  { %p411_p7 = pnand %p410_p6, %p404_p3 }
  0x10   :  { %414 = shalt.err (!%p411_p7)
}
  0x11   :  { %s488_s28 = smov 64   ;;  %s489_s29 = smov 4  }
  0x12   :  { %34 = dma.hbm_to_vmem [thread:$0]  %s587_s1, 1152, %s29_s19, [#allocation6], %s488_s28, %s488_s28, %s489_s29  }
  0x13   :  { %s490_s7 = smov [#allocation2]   ;;  %s491_s9 = smov [#allocation7]  }
  0x14   :  { %s19_s8 = sshll.u32 %s490_s7, 4  ;;  %s42_s10 = sshll.u32 %s491_s9, 4  ;;  %s20_s8 = int_to_ptr.vmem [resolvable:$true] %s19_s8  ;;  %s43_s10 = int_to_ptr.vmem [resolvable:$true] %s42_s10 }
  0x15   :  { %s415_s13 = scalar_lea.hbm %s586_s0, 256 }
  0x16   :  { %p416_p8 = scmp.ne.s32.totalorder %s586_s0, %s415_s13  ;;  %p419_p9 = scmp.lt.u32.totalorder %s415_s13, %s586_s0 }
  0x18   :  { %p421_p10 = pnand %p419_p9, %p416_p8 }
  0x1a   :  { %424 = shalt.err (!%p421_p10)
}
  0x1b   :  { %s425_s1 = scalar_lea.vmem %s20_s8, 256  ;;  %p430_p12 = scmp.lt.s32.totalorder %s20_s8, %s20_s8 }
  0x1c   :  { %p426_p11 = scmp.ne.s32.totalorder %s20_s8, %s425_s1  ;;  %p431_p13 = scmp.lt.s32.totalorder %s425_s1, %s425_s1 }
  0x1e   :  { %p432_p0 = por %p431_p13, %p430_p12 }
  0x20   :  { %p433_p1 = pnand %p432_p0, %p426_p11 }
  0x22   :  { %436 = shalt.err (!%p433_p1)
}
  0x23   :  { %22 = dma.hbm_to_vmem [thread:$0]  %s586_s0, 256, %s20_s8, [#allocation3]  }
  0x24   :  { %s437_s22 = scalar_lea.hbm %s589_s3, 1024 }
  0x25   :  { %p438_p2 = scmp.ne.s32.totalorder %s589_s3, %s437_s22  ;;  %p441_p3 = scmp.lt.u32.totalorder %s437_s22, %s589_s3 }
  0x27   :  { %p443_p4 = pnand %p441_p3, %p438_p2 }
  0x29   :  { %446 = shalt.err (!%p443_p4)
}
  0x2a   :  { %s447_s27 = scalar_lea.vmem %s43_s10, 1024  ;;  %p452_p6 = scmp.lt.s32.totalorder %s43_s10, %s43_s10 }
  0x2b   :  { %p448_p5 = scmp.ne.s32.totalorder %s43_s10, %s447_s27  ;;  %p453_p7 = scmp.lt.s32.totalorder %s447_s27, %s447_s27 }
  0x2d   :  { %p454_p8 = por %p453_p7, %p452_p6 }
  0x2f   :  { %p455_p9 = pnand %p454_p8, %p448_p5 }
  0x31   :  { %458 = shalt.err (!%p455_p9)
}
  0x32   :  { %48 = dma.hbm_to_vmem [thread:$0]  %s589_s3, 1024, %s43_s10, [#allocation6], %s488_s28, %s488_s28, %s489_s29  }
  0x33   :  { %481 = dma.done.wait [#allocation3], 256  }
  0x34   :  { %482 = vsyncadd [#allocation3], 4294967040 }
  0x35   :  { %483 = dma.done.wait [#allocation6], 2176  }
  0x36   :  { %484 = vsyncadd [#allocation6], 4294965120  ;;  %v492_v0 = vmov 0   ;;  %v493_v1 = vmov 0.0   ;;  %v376_v2 = vld [vmem:[#allocation5] sm:$0xff]   ;;  %v377_v3 = vld [vmem:[#allocation5 + $0x8] sm:$0xff]  }
  0x37   :  { %148 = vmatprep.subr.bf16.mxu0 %v492_v0  ;;  %347 = vmatprep.subr.bf16.mxu1 %v493_v1  ;;  %v378_v4 = vld [vmem:[#allocation5 + $0x10] sm:$0xff]   ;;  %v379_v5 = vld [vmem:[#allocation5 + $0x18] sm:$0xff]   ;;  %vm144_vm0 = vcmask 130048   ;;  %v385_v8 = vld [vmem:[#allocation7] sm:$0xff]   ;;  %vm494_vm1 = vmmov 0   ;;  %s495_s7 = smov [#allocation8]  }
  0x38   :  { %149 = vmatpush1.bf16.msra.mxu0 %v376_v2  ;;  %v62_v6 = vld [vmem:[#allocation2 + $0x8] sm:$0xff]  ;;  %348 = vmatpush3.bf16.msra.mxu1 %v385_v8  ;;  %v386_v9 = vld [vmem:[#allocation7 + $0x8] sm:$0xff]   ;;  %v380_v10 = vld [vmem:[#allocation5 + $0x20] sm:$0xff]   ;;  %s308_s8 = sshll.u32 %s495_s7, 4  ;;  %s309_s8 = int_to_ptr.vmem [resolvable:$true] %s308_s8 }
  0x39   :  { %150 = vmatprep.subr.bf16.mxu0 %v492_v0  ;;  %v64_v7 = vpack.c.bf16 %v62_v6, %v62_v6  ;;  %349 = vmatprep.subr.bf16.mxu1 %v493_v1  ;;  %v387_v11 = vld [vmem:[#allocation7 + $0x10] sm:$0xff]   ;;  %v381_v12 = vld [vmem:[#allocation5 + $0x28] sm:$0xff]   ;;  %v388_v13 = vld [vmem:[#allocation7 + $0x18] sm:$0xff]   ;;  %p464_p11 = scmp.lt.s32.totalorder %s309_s8, %s309_s8 }
  0x3a   :  { %v382_v14 = vld [vmem:[#allocation5 + $0x30] sm:$0xff]   ;;  %v389_v15 = vld [vmem:[#allocation7 + $0x20] sm:$0xff]   ;;  %v383_v16 = vld [vmem:[#allocation5 + $0x38] sm:$0xff]   ;;  %363 = vmatprep.mubr.msk.bf16.mxu1 %vm494_vm1, %v493_v1 }
  0x3b   :  { %328 = vmatprep.mubr.msk.bf16.mxu0 %vm144_vm0, %v64_v7  ;;  %v390_v17 = vld [vmem:[#allocation7 + $0x28] sm:$0xff]   ;;  %v384_v18 = vld [vmem:[#allocation5 + $0x40] sm:$0xff]   ;;  %v391_v21 = vld [vmem:[#allocation7 + $0x30] sm:$0xff]  }
  0x3c   :  { %151 = vmatpush1.bf16.msra.mxu0 %v377_v3  ;;  %350 = vmatpush3.bf16.msra.mxu1 %v386_v9  ;;  %v61_v19 = vld [vmem:[#allocation2] sm:$0xff]  ;;  %v392_v22 = vld [vmem:[#allocation7 + $0x38] sm:$0xff]  }
  0x3d   :  { %152 = vmatprep.subr.bf16.mxu0 %v492_v0  ;;  %351 = vmatprep.subr.bf16.mxu1 %v493_v1  ;;  %v63_v20 = vpack.c.bf16 %v61_v19, %v61_v19  ;;  %v318_v23 = vld [vmem:[%s588_s2] ss:$0 sm:$0xff]  ;;  %s459_s2 = scalar_lea.vmem %s309_s8, 128 }
  0x3e   :  { %v329_v31 = vld [vmem:[%s590_s4] ss:$0 sm:$0xff]  ;;  %p460_p10 = scmp.ne.s32.totalorder %s309_s8, %s459_s2  ;;  %p465_p12 = scmp.lt.s32.totalorder %s459_s2, %s459_s2 }
  0x40   :  { %153 = vmatpush1.bf16.msra.mxu0 %v378_v4  ;;  %352 = vmatpush3.bf16.msra.mxu1 %v387_v11  ;;  %p466_p13 = por %p465_p12, %p464_p11 }
  0x41   :  { %154 = vmatprep.subr.bf16.mxu0 %v492_v0  ;;  %353 = vmatprep.subr.bf16.mxu1 %v493_v1 }
  0x42   :  { %p467_p0 = pnand %p466_p13, %p460_p10 }
  0x44   :  { %155 = vmatpush1.bf16.msra.mxu0 %v379_v5  ;;  %354 = vmatpush3.bf16.msra.mxu1 %v388_v13 }
  0x45   :  { %156 = vmatprep.subr.bf16.mxu0 %v492_v0  ;;  %355 = vmatprep.subr.bf16.mxu1 %v493_v1 }
  0x48   :  { %157 = vmatpush1.bf16.msra.mxu0 %v380_v10  ;;  %356 = vmatpush3.bf16.msra.mxu1 %v389_v15 }
  0x49   :  { %158 = vmatprep.subr.bf16.mxu0 %v492_v0  ;;  %357 = vmatprep.subr.bf16.mxu1 %v493_v1 }
  0x4c   :  { %159 = vmatpush1.bf16.msra.mxu0 %v381_v12  ;;  %358 = vmatpush3.bf16.msra.mxu1 %v390_v17 }
  0x4d   :  { %160 = vmatprep.subr.bf16.mxu0 %v492_v0  ;;  %359 = vmatprep.subr.bf16.mxu1 %v493_v1 }
  0x50   :  { %161 = vmatpush1.bf16.msra.mxu0 %v382_v14  ;;  %360 = vmatpush3.bf16.msra.mxu1 %v391_v21 }
  0x51   :  { %162 = vmatprep.subr.bf16.mxu0 %v492_v0  ;;  %361 = vmatprep.subr.bf16.mxu1 %v493_v1 }
  0x54   :  { %163 = vmatpush1.bf16.msra.mxu0 %v383_v16  ;;  %362 = vmatpush3.bf16.msra.mxu1 %v392_v22 }
  0x55   :  { %164 = vmatprep.subr.bf16.mxu0 %v492_v0 }
  0x58   :  { %165 = vmatpush1.bf16.msra.mxu0 %v384_v18 }
  0x5b   :  { %181 = vmatmul.mubr.bf16.vlgmr.msra.gmra.mrb[0].mxu0 %v63_v20 }
 0x12e   :  { %v182_v24 = vpop.f32.mrb[0].mxu0 }
 0x12f   :  { %v183_v25 = vadd.f32 %v318_v23, %v182_v24  ;;  %v184_v26 = vpop.f32.mrb[1].mxu0 }
 0x130   :  { %v185_v27 = vpop.f32.mrb[2].mxu0 }
 0x131   :  { %v188_v28 = vmax.f32 %v183_v25, 0.0  ;;  %v186_v29 = vpop.f32.mrb[3].mxu0 }
 0x133   :  { %v189_v30 = vpack.c.bf16 %v188_v28, %v188_v28 }
 0x135   :  { %364 = vmatmul.mubr.bf16.vlgmr.msra.gmra.mrb[0].mxu1 %v189_v30 }
 0x208   :  { %v295_v32 = vpop.f32.mrb[0].mxu1 }
 0x209   :  { %v296_v33 = vadd.f32 %v329_v31, %v295_v32  ;;  %v365_v34 = vpop.f32.mrb[1].mxu1 }
 0x20a   :  { %v298_v35 = vpop.f32.mrb[2].mxu1 }
 0x20b   :  { %301 = vst [vmem:[#allocation8] sm:$0xff] %v296_v33  ;;  %v366_v36 = vpop.f32.mrb[3].mxu1 }
 0x20c   :  { %470 = shalt.err (!%p467_p0)
}
 0x20d   :  { %s471_s4 = scalar_lea.hbm %s591_s5, 128 }
 0x20e   :  { %p472_p1 = scmp.ne.s32.totalorder %s591_s5, %s471_s4  ;;  %p475_p2 = scmp.lt.u32.totalorder %s471_s4, %s591_s5 }
 0x210   :  { %p477_p3 = pnand %p475_p2, %p472_p1 }
 0x212   :  { %480 = shalt.err (!%p477_p3)
}
 0x213   :  { %311 = dma.vmem_to_hbm [thread:$0]  %s309_s8, 128, %s591_s5, [#allocation4]  }
 0x214   :  { %485 = dma.done.wait [#allocation4], 128  }
 0x215   :  { %486 = vsyncadd [#allocation4], 4294967168 }
 0x216   :  { %315 = vsyncpa [#allocation3], 1 }
 0x217   :  { %316 = vsyncpa [#allocation6], 1 }
 0x218   :  { %317 = vsyncpa [#allocation4], 1 }

</bundles_post_ra>
